<compile_context>
chip_gen: v7x
topology: tpu7x:2x2x1
jax: 0.10.0
libtpu: 0.0.40
codegen_flags: <defaults>
</compile_context>

<pallas_src>
import jax
import jax.numpy as jnp
import numpy as np
from jax.experimental import pallas as pl
from jax.experimental.pallas import tpu as pltpu

LANES = 128
SUBLANES = 8


def _round_up(x, m):
    return ((x + m - 1) // m) * m


def actor_mu_kernel(x_ref, w1_ref, b1_ref, w2_ref, b2_ref, w3_ref, b3_ref, mu_ref):
    """Fused 3-layer MLP: relu(l1) -> relu(l2) -> sigmoid(mu_head) on one batch tile."""
    # In-kernel cast of the f32 state to the MXU dtype (bf16 or f32) — avoids a
    # separate un-fused XLA cast pass over state in HBM.
    x = x_ref[...].astype(w1_ref.dtype)
    # Layer 1: MXU matmul (f32 accumulate), f32 bias + ReLU epilogue.
    h1 = jnp.dot(x, w1_ref[...], preferred_element_type=jnp.float32) + b1_ref[...]
    h1 = jnp.maximum(h1, 0.0)
    # Layer 2.
    h2 = jnp.dot(h1.astype(w2_ref.dtype), w2_ref[...],
                 preferred_element_type=jnp.float32) + b2_ref[...]
    h2 = jnp.maximum(h2, 0.0)
    # mu head: narrow (tm, action_dim) output (last dim == full array dim).
    z = jnp.dot(h2.astype(w3_ref.dtype), w3_ref[...],
                preferred_element_type=jnp.float32) + b3_ref[...]
    mu_ref[...] = jax.nn.sigmoid(z).astype(mu_ref.dtype)


def prepare_params(params, *, use_bf16=True):
    """One-time param prep: pad hidden width to a multiple of 128 lanes and
    (optionally) cast weights to bf16 for the MXU. Biases stay f32 (epilogue)."""
    w1 = jnp.asarray(params["w1"], jnp.float32)            # (state_dim, net_width)
    b1 = jnp.asarray(params["b1"], jnp.float32).reshape(1, -1)
    w2 = jnp.asarray(params["w2"], jnp.float32)            # (net_width, net_width)
    b2 = jnp.asarray(params["b2"], jnp.float32).reshape(1, -1)
    w3 = jnp.asarray(params["w3"], jnp.float32)            # (net_width, action_dim)
    b3 = jnp.asarray(params["b3"], jnp.float32).reshape(1, -1)

    state_dim, net_width = w1.shape
    action_dim = w3.shape[1]
    H = _round_up(net_width, LANES)                        # lane-dense hidden width

    w1p = jnp.zeros((state_dim, H), jnp.float32).at[:, :net_width].set(w1)
    b1p = jnp.zeros((1, H), jnp.float32).at[:, :net_width].set(b1)
    w2p = jnp.zeros((H, H), jnp.float32).at[:net_width, :net_width].set(w2)
    b2p = jnp.zeros((1, H), jnp.float32).at[:, :net_width].set(b2)
    w3p = jnp.zeros((H, action_dim), jnp.float32).at[:net_width, :].set(w3)
    b3p = b3

    wdtype = jnp.bfloat16 if use_bf16 else jnp.float32
    return {
        "w1": w1p.astype(wdtype), "b1": b1p,
        "w2": w2p.astype(wdtype), "b2": b2p,
        "w3": w3p.astype(wdtype), "b3": b3p,
        "state_dim": state_dim, "hidden": H, "action_dim": action_dim,
    }


def gaussian_actor_mu_forward(state, prep, *, tile_m=2048):
    """state: (B, state_dim) f32. prep: output of prepare_params().

    Returns mu of shape (B, action_dim), matching the PyTorch module's forward().
    """
    B, state_dim = state.shape
    assert state_dim == prep["state_dim"]
    H = prep["hidden"]
    A = prep["action_dim"]

    # Balanced batch tiling (multiple of 8 rows). Guarantee >= 2 grid steps when
    # B >= 16 so "parallel" semantics can shard across v7x's two TensorCores.
    n_tiles = max(pl.cdiv(B, tile_m), 2 if B >= 2 * SUBLANES else 1)
    tm = _round_up(pl.cdiv(B, n_tiles), SUBLANES)
    grid = (pl.cdiv(B, tm),)

    const = lambda i: (0, 0)  # params: same block every iteration -> VMEM-resident

    wbytes = sum(int(np.prod(prep[k].shape)) * prep[k].dtype.itemsize
                 for k in ("w1", "b1", "w2", "b2", "w3", "b3"))
    cost = pl.CostEstimate(
        flops=2 * B * (state_dim * H + H * H + H * A),
        transcendentals=B * A,
        bytes_accessed=B * state_dim * state.dtype.itemsize + B * A * 4 + wbytes,
    )

    return pl.pallas_call(
        actor_mu_kernel,
        out_shape=jax.ShapeDtypeStruct((B, A), jnp.float32),
        grid=grid,
        in_specs=[
            pl.BlockSpec((tm, state_dim), lambda i: (i, 0)),   # state tile (f32)
            pl.BlockSpec((state_dim, H), const),               # w1
            pl.BlockSpec((1, H), const),                       # b1
            pl.BlockSpec((H, H), const),                       # w2
            pl.BlockSpec((1, H), const),                       # b2
            pl.BlockSpec((H, A), const),                       # w3
            pl.BlockSpec((1, A), const),                       # b3
        ],
        out_specs=pl.BlockSpec((tm, A), lambda i: (i, 0)),     # narrow output
        compiler_params=pltpu.CompilerParams(
            dimension_semantics=("parallel",),
        ),
        cost_estimate=cost,
    )(state, prep["w1"], prep["b1"], prep["w2"], prep["b2"], prep["w3"], prep["b3"])


def init_params(key, state_dim, net_width, action_dim, log_std=0.0):
    """Deterministic init mimicking nn.Linear default (uniform +/- 1/sqrt(fan_in)),
    with mu_head.weight *= 0.1 and mu_head.bias = 0, as in the PyTorch module."""
    k1, k2, k3, k4, k5, k6 = jax.random.split(key, 6)

    def linear(kw, kb, fan_in, fan_out):
        bound = 1.0 / np.sqrt(fan_in)
        # stored transposed: (in, out) so the kernel computes x @ W + b
        w = jax.random.uniform(kw, (fan_in, fan_out), jnp.float32, -bound, bound)
        b = jax.random.uniform(kb, (1, fan_out), jnp.float32, -bound, bound)
        return w, b

    w1, b1 = linear(k1, k2, state_dim, net_width)
    w2, b2 = linear(k3, k4, net_width, net_width)
    w3, b3 = linear(k5, k6, net_width, action_dim)
    w3 = w3 * 0.1
    b3 = b3 * 0.0
    # action_log_std is a parameter used only in get_dist(), not in forward().
    action_log_std = jnp.ones((1, action_dim), jnp.float32) * log_std
    return {"w1": w1, "b1": b1, "w2": w2, "b2": b2, "w3": w3, "b3": b3,
            "action_log_std": action_log_std}


def reference_forward(state, p):
    h1 = jnp.maximum(state @ p["w1"] + p["b1"], 0.0)
    h2 = jnp.maximum(h1 @ p["w2"] + p["b2"], 0.0)
    return jax.nn.sigmoid(h2 @ p["w3"] + p["b3"])


if __name__ == "__main__":
    state_dim, action_dim, net_width = 16, 4, 32
    batch = 8

    key = jax.random.PRNGKey(0)
    kp, kx, kx2 = jax.random.split(key, 3)
    params = init_params(kp, state_dim, net_width, action_dim, log_std=0.0)
    state = jax.random.normal(kx, (batch, state_dim), jnp.float32)
    ref = reference_forward(state, params)

    # One-time param prep (padding + dtype), hoisted out of the forward path.
    prep_f32 = prepare_params(params, use_bf16=False)
    prep_bf16 = prepare_params(params, use_bf16=True)

    # f32 path (tight tolerance).
    mu_f32 = gaussian_actor_mu_forward(state, prep_f32)
    mu_f32 = jax.block_until_ready(mu_f32)
    np.testing.assert_allclose(np.asarray(mu_f32), np.asarray(ref), rtol=1e-5, atol=1e-5)
    assert mu_f32.shape == (batch, action_dim)

    # bf16-weight path (MXU dtype; f32 accumulation, in-kernel input cast).
    mu_bf16 = gaussian_actor_mu_forward(state, prep_bf16)
    mu_bf16 = jax.block_until_ready(mu_bf16)
    np.testing.assert_allclose(np.asarray(mu_bf16), np.asarray(ref), rtol=2e-2, atol=2e-2)

    # Multi-tile / ragged-batch path: batch not a multiple of the tile size.
    batch2 = 37
    state2 = jax.random.normal(kx2, (batch2, state_dim), jnp.float32)
    ref2 = reference_forward(state2, params)
    mu2 = gaussian_actor_mu_forward(state2, prep_f32, tile_m=16)
    mu2 = jax.block_until_ready(mu2)
    np.testing.assert_allclose(np.asarray(mu2), np.asarray(ref2), rtol=1e-5, atol=1e-5)
    assert mu2.shape == (batch2, action_dim)

    print("KERNEL_OK")
</pallas_src>

<mosaic_0001>
module attributes {stable_mosaic.version = 11 : i64} {
  func.func @actor_mu_kernel(%arg0: i32, %arg1: memref<8x16xf32, #tpu.memory_space<vmem>>, %arg2: memref<16x128xf32, #tpu.memory_space<vmem>>, %arg3: memref<1x128xf32, #tpu.memory_space<vmem>>, %arg4: memref<128x128xf32, #tpu.memory_space<vmem>>, %arg5: memref<1x128xf32, #tpu.memory_space<vmem>>, %arg6: memref<128x4xf32, #tpu.memory_space<vmem>>, %arg7: memref<1x4xf32, #tpu.memory_space<vmem>>, %arg8: memref<8x4xf32, #tpu.memory_space<vmem>>) attributes {dimension_semantics = [#tpu.dimension_semantics<parallel>], iteration_bounds = array<i64: 1>, scalar_prefetch = 0 : i64, scratch_operands = 0 : i64, tpu.core_type = #tpu.core_type<tc>, window_params = [{transform_indices = @transform_0, window_bounds = array<i64: 8, 16>}, {pipeline_mode = #tpu.pipeline_mode<synchronous>, transform_indices = @transform_1, window_bounds = array<i64: 16, 128>}, {pipeline_mode = #tpu.pipeline_mode<synchronous>, transform_indices = @transform_2, window_bounds = array<i64: 1, 128>}, {pipeline_mode = #tpu.pipeline_mode<synchronous>, transform_indices = @transform_3, window_bounds = array<i64: 128, 128>}, {pipeline_mode = #tpu.pipeline_mode<synchronous>, transform_indices = @transform_4, window_bounds = array<i64: 1, 128>}, {pipeline_mode = #tpu.pipeline_mode<synchronous>, transform_indices = @transform_5, window_bounds = array<i64: 128, 4>}, {pipeline_mode = #tpu.pipeline_mode<synchronous>, transform_indices = @transform_6, window_bounds = array<i64: 1, 4>}, {transform_indices = @transform_7, window_bounds = array<i64: 8, 4>}]} {
    %c0 = arith.constant 0 : index
    %c0_0 = arith.constant 0 : index
    %0 = vector.load %arg1[%c0, %c0_0] : memref<8x16xf32, #tpu.memory_space<vmem>>, vector<8x16xf32>
    %c0_1 = arith.constant 0 : index
    %c0_2 = arith.constant 0 : index
    %1 = vector.load %arg2[%c0_1, %c0_2] : memref<16x128xf32, #tpu.memory_space<vmem>>, vector<16x128xf32>
    %cst = arith.constant dense<0.000000e+00> : vector<8x128xf32>
    %2 = tpu.matmul %0, %1, %cst {dimension_numbers = #tpu.dot_dimension_numbers<[1], [0], [0], [1], [0, 0, 1, 1], [], []>} : vector<8x16xf32>, vector<16x128xf32>, vector<8x128xf32> -> vector<8x128xf32>
    %c0_3 = arith.constant 0 : index
    %c0_4 = arith.constant 0 : index
    %3 = vector.load %arg3[%c0_3, %c0_4] : memref<1x128xf32, #tpu.memory_space<vmem>>, vector<1x128xf32>
    %4 = vector.broadcast %3 : vector<1x128xf32> to vector<8x128xf32>
    %5 = arith.addf %2, %4 : vector<8x128xf32>
    %cst_5 = arith.constant 0.000000e+00 : f32
    %6 = vector.broadcast %cst_5 : f32 to vector<8x128xf32>
    %7 = arith.maximumf %5, %6 : vector<8x128xf32>
    %c0_6 = arith.constant 0 : index
    %c0_7 = arith.constant 0 : index
    %8 = vector.load %arg4[%c0_6, %c0_7] : memref<128x128xf32, #tpu.memory_space<vmem>>, vector<128x128xf32>
    %cst_8 = arith.constant dense<0.000000e+00> : vector<8x128xf32>
    %9 = tpu.matmul %7, %8, %cst_8 {dimension_numbers = #tpu.dot_dimension_numbers<[1], [0], [0], [1], [0, 0, 1, 1], [], []>} : vector<8x128xf32>, vector<128x128xf32>, vector<8x128xf32> -> vector<8x128xf32>
    %c0_9 = arith.constant 0 : index
    %c0_10 = arith.constant 0 : index
    %10 = vector.load %arg5[%c0_9, %c0_10] : memref<1x128xf32, #tpu.memory_space<vmem>>, vector<1x128xf32>
    %11 = vector.broadcast %10 : vector<1x128xf32> to vector<8x128xf32>
    %12 = arith.addf %9, %11 : vector<8x128xf32>
    %cst_11 = arith.constant 0.000000e+00 : f32
    %13 = vector.broadcast %cst_11 : f32 to vector<8x128xf32>
    %14 = arith.maximumf %12, %13 : vector<8x128xf32>
    %c0_12 = arith.constant 0 : index
    %c0_13 = arith.constant 0 : index
    %15 = vector.load %arg6[%c0_12, %c0_13] : memref<128x4xf32, #tpu.memory_space<vmem>>, vector<128x4xf32>
    %cst_14 = arith.constant dense<0.000000e+00> : vector<8x4xf32>
    %16 = tpu.matmul %14, %15, %cst_14 {dimension_numbers = #tpu.dot_dimension_numbers<[1], [0], [0], [1], [0, 0, 1, 1], [], []>} : vector<8x128xf32>, vector<128x4xf32>, vector<8x4xf32> -> vector<8x4xf32>
    %c0_15 = arith.constant 0 : index
    %c0_16 = arith.constant 0 : index
    %17 = vector.load %arg7[%c0_15, %c0_16] : memref<1x4xf32, #tpu.memory_space<vmem>>, vector<1x4xf32>
    %18 = vector.broadcast %17 : vector<1x4xf32> to vector<8x4xf32>
    %19 = arith.addf %16, %18 : vector<8x4xf32>
    %20 = arith.negf %19 : vector<8x4xf32>
    %21 = math.exp %20 : vector<8x4xf32>
    %cst_17 = arith.constant 1.000000e+00 : f32
    %22 = vector.broadcast %cst_17 : f32 to vector<8x4xf32>
    %23 = arith.addf %22, %21 : vector<8x4xf32>
    %24 = arith.divf %22, %23 : vector<8x4xf32>
    %c0_18 = arith.constant 0 : index
    %c0_19 = arith.constant 0 : index
    %25 = vector.load %arg8[%c0_18, %c0_19] : memref<8x4xf32, #tpu.memory_space<vmem>>, vector<8x4xf32>
    tpu.vector_store %arg8[%c0_18, %c0_19], %24 {strides = array<i32>} : memref<8x4xf32, #tpu.memory_space<vmem>>, vector<8x4xf32>,
    return
  }
  func.func @transform_0(%arg0: i32) -> (i32, i32) {
    %c0_i32 = arith.constant 0 : i32
    %c0_i32_0 = arith.constant 0 : i32
    return %arg0, %c0_i32 : i32, i32
  }
  func.func @transform_1(%arg0: i32) -> (i32, i32) {
    %c0_i32 = arith.constant 0 : i32
    %c0_i32_0 = arith.constant 0 : i32
    %c0_i32_1 = arith.constant 0 : i32
    return %c0_i32, %c0_i32_0 : i32, i32
  }
  func.func @transform_2(%arg0: i32) -> (i32, i32) {
    %c0_i32 = arith.constant 0 : i32
    %c0_i32_0 = arith.constant 0 : i32
    %c0_i32_1 = arith.constant 0 : i32
    return %c0_i32, %c0_i32_0 : i32, i32
  }
  func.func @transform_3(%arg0: i32) -> (i32, i32) {
    %c0_i32 = arith.constant 0 : i32
    %c0_i32_0 = arith.constant 0 : i32
    %c0_i32_1 = arith.constant 0 : i32
    return %c0_i32, %c0_i32_0 : i32, i32
  }
  func.func @transform_4(%arg0: i32) -> (i32, i32) {
    %c0_i32 = arith.constant 0 : i32
    %c0_i32_0 = arith.constant 0 : i32
    %c0_i32_1 = arith.constant 0 : i32
    return %c0_i32, %c0_i32_0 : i32, i32
  }
  func.func @transform_5(%arg0: i32) -> (i32, i32) {
    %c0_i32 = arith.constant 0 : i32
    %c0_i32_0 = arith.constant 0 : i32
    %c0_i32_1 = arith.constant 0 : i32
    return %c0_i32, %c0_i32_0 : i32, i32
  }
  func.func @transform_6(%arg0: i32) -> (i32, i32) {
    %c0_i32 = arith.constant 0 : i32
    %c0_i32_0 = arith.constant 0 : i32
    %c0_i32_1 = arith.constant 0 : i32
    return %c0_i32, %c0_i32_0 : i32, i32
  }
  func.func @transform_7(%arg0: i32) -> (i32, i32) {
    %c0_i32 = arith.constant 0 : i32
    %c0_i32_0 = arith.constant 0 : i32
    return %arg0, %c0_i32 : i32, i32
  }
}

</mosaic_0001>

<bundles_post_ra>
// kernel: tpu_custom_call.1
= control target key start
LH: loop header
LB: loop body
LE: loop exit
PB: predicated region body
PF: predicated region fallthrough
CT: control target
= control target key end

     0   :  { %12 = vsyncpa [#allocation3], 0  ;;  %s529_s24 = smov [#allocation2]   ;;  %s718_s0 = inlined_call_operand.vmem [shape: f32[8,16], index: 0, kind: input, shape index: {}]   ;;  %s719_s1 = inlined_call_operand.hbm [shape: f32[16,128], index: 1, kind: input, shape index: {}]   ;;  %s720_s2 = inlined_call_operand.vmem [shape: f32[1,128], index: 2, kind: input, shape index: {}]   ;;  %s721_s3 = inlined_call_operand.vmem [shape: f32[128,128], index: 3, kind: input, shape index: {}]   ;;  %s722_s4 = inlined_call_operand.vmem [shape: f32[1,128], index: 4, kind: input, shape index: {}]   ;;  %s723_s5 = inlined_call_operand.vmem [shape: f32[128,4], index: 5, kind: input, shape index: {}]   ;;  %s724_s6 = inlined_call_operand.vmem [shape: f32[1,4], index: 6, kind: input, shape index: {}]   ;;  %s725_s7 = inlined_call_operand.vmem [shape: f32[8,4], index: 7, kind: output, shape index: {}]  }
   0x1   :  { %s20_s25 = sshll.u32 %s529_s24, 4  ;;  %s505_s28 = scalar_lea.hbm %s719_s1, 256  ;;  %s21_s25 = int_to_ptr.vmem [resolvable:$true] %s20_s25 }
   0x2   :  { %p506_p0 = scmp.ne.s32.totalorder %s719_s1, %s505_s28  ;;  %p509_p1 = scmp.lt.u32.totalorder %s505_s28, %s719_s1 }
   0x4   :  { %p511_p2 = pnand %p509_p1, %p506_p0 }
   0x6   :  { %514 = shalt.err (!%p511_p2)
}
   0x7   :  { %s515_s10 = scalar_lea.vmem %s21_s25, 256  ;;  %p520_p4 = scmp.lt.s32.totalorder %s21_s25, %s21_s25 }
   0x8   :  { %p516_p3 = scmp.ne.s32.totalorder %s21_s25, %s515_s10  ;;  %p521_p5 = scmp.lt.s32.totalorder %s515_s10, %s515_s10 }
   0xa   :  { %p522_p6 = por %p521_p5, %p520_p4 }
   0xc   :  { %p523_p7 = pnand %p522_p6, %p516_p3 }
   0xe   :  { %526 = shalt.err (!%p523_p7)
}
   0xf   :  { %s530_s11 = smov 128   ;;  %s531_s12 = smov 8  }
  0x10   :  { %26 = dma.hbm_to_vmem [thread:$0]  %s719_s1, 256, %s21_s25, [#allocation3], %s530_s11, %s530_s11, %s531_s12  }
  0x11   :  { %527 = dma.done.wait [#allocation3], 256  }
  0x12   :  { %528 = vsyncadd [#allocation3], 4294967040  ;;  %v532_v0 = vmov 0.0|0.0   ;;  %vm533_vm0 = vmmov 0   ;;  %v534_v1 = vmov 0.0   ;;  %v41_v2 = vld [vmem:[#allocation2] sm:$0xff] }
  0x13   :  { %444 = vmatprep.subr.bf16.mxu0 %v532_v0  ;;  %371 = vmatprep.mubr.msk.f32.mxu0 %vm533_vm0, %v534_v1  ;;  %v42_v3 = vld [vmem:[#allocation2 + $0x8] sm:$0xff]  ;;  %v125_v5 = vld [vmem:[%s721_s3] sm:$0xff]  ;;  %v127_v7 = vld [vmem:[%s721_s3 + $0x10] sm:$0xff]  ;;  %vm50_vm1 = vcmask 130048   ;;  %vm318_vm2 = vcmask 31744  }
  0x14   :  { %447 = vmatprep.subr.bf16.mxu1 %v532_v0  ;;  %406 = vmatprep.mubr.msk.f32.mxu1 %vm533_vm0, %v534_v1  ;;  %v445_v4 = vpack.c.bf16 %v42_v3, %v41_v2  ;;  %v126_v6 = vld [vmem:[%s721_s3 + $0x8] sm:$0xff]  ;;  %v128_v9 = vld [vmem:[%s721_s3 + $0x18] sm:$0xff]  ;;  %v40_v10 = vld [vmem:[%s718_s0] sm:$0xff] }
  0x15   :  { %v448_v8 = vpack.c.bf16 %v126_v6, %v125_v5  ;;  %v451_v11 = vpack.c.bf16 %v128_v9, %v127_v7  ;;  %v129_v12 = vld [vmem:[%s721_s3 + $0x20] sm:$0xff]  ;;  %v130_v13 = vld [vmem:[%s721_s3 + $0x28] sm:$0xff]  ;;  %v131_v15 = vld [vmem:[%s721_s3 + $0x30] sm:$0xff] }
  0x16   :  { %446 = vmatpush3.bf16.msra.mxu0 %v445_v4  ;;  %v454_v14 = vpack.c.bf16 %v130_v13, %v129_v12  ;;  %v132_v16 = vld [vmem:[%s721_s3 + $0x38] sm:$0xff]  ;;  %v133_v18 = vld [vmem:[%s721_s3 + $0x40] sm:$0xff]  ;;  %v134_v19 = vld [vmem:[%s721_s3 + $0x48] sm:$0xff] }
  0x17   :  { %449 = vmatpush3.bf16.msra.mxu1 %v448_v8  ;;  %471 = vmatprep.subr.bf16.mxu0 %v532_v0  ;;  %v457_v17 = vpack.c.bf16 %v132_v16, %v131_v15  ;;  %v460_v20 = vpack.c.bf16 %v134_v19, %v133_v18  ;;  %v135_v21 = vld [vmem:[%s721_s3 + $0x50] sm:$0xff]  ;;  %v136_v22 = vld [vmem:[%s721_s3 + $0x58] sm:$0xff]  ;;  %v137_v24 = vld [vmem:[%s721_s3 + $0x60] sm:$0xff] }
  0x18   :  { %450 = vmatprep.subr.bf16.mxu1 %v532_v0  ;;  %v463_v23 = vpack.c.bf16 %v136_v22, %v135_v21  ;;  %v138_v25 = vld [vmem:[%s721_s3 + $0x68] sm:$0xff]  ;;  %v139_v27 = vld [vmem:[%s721_s3 + $0x70] sm:$0xff]  ;;  %v140_v28 = vld [vmem:[%s721_s3 + $0x78] sm:$0xff] }
  0x19   :  { %372 = vmatmul.mubr.msk.f32.vlgmr.msra.gmra.mrb[0].mxu0 %vm50_vm1, %v40_v10  ;;  %v466_v26 = vpack.c.bf16 %v138_v25, %v137_v24  ;;  %v469_v29 = vpack.c.bf16 %v140_v28, %v139_v27  ;;  %v219_v30 = vld [vmem:[%s723_s5] sm:$0xff]  ;;  %v220_v31 = vld [vmem:[%s723_s5 + $0x8] sm:$0xff]  ;;  %v221_v32 = vld [vmem:[%s723_s5 + $0x10] sm:$0xff] }
  0x1a   :  { %441 = vmatprep.mubr.msk.f32.mxu0 %vm533_vm0, %v534_v1  ;;  %v472_v33 = vpack.c.bf16 %v220_v31, %v219_v30  ;;  %v222_v34 = vld [vmem:[%s723_s5 + $0x18] sm:$0xff]  ;;  %v223_v36 = vld [vmem:[%s723_s5 + $0x20] sm:$0xff]  ;;  %v224_v37 = vld [vmem:[%s723_s5 + $0x28] sm:$0xff] }
  0x1b   :  { %452 = vmatpush3.bf16.msra.mxu1 %v451_v11  ;;  %v475_v35 = vpack.c.bf16 %v222_v34, %v221_v32  ;;  %v478_v38 = vpack.c.bf16 %v224_v37, %v223_v36  ;;  %v225_v39 = vld [vmem:[%s723_s5 + $0x30] sm:$0xff]  ;;  %v226_v40 = vld [vmem:[%s723_s5 + $0x38] sm:$0xff]  ;;  %v227_v42 = vld [vmem:[%s723_s5 + $0x40] sm:$0xff] }
  0x1c   :  { %453 = vmatprep.subr.bf16.mxu1 %v532_v0  ;;  %473 = vmatpush3.bf16.msra.mxu0 %v472_v33  ;;  %v481_v41 = vpack.c.bf16 %v226_v40, %v225_v39  ;;  %v228_v43 = vld [vmem:[%s723_s5 + $0x48] sm:$0xff]  ;;  %v229_v45 = vld [vmem:[%s723_s5 + $0x50] sm:$0xff]  ;;  %v230_v46 = vld [vmem:[%s723_s5 + $0x58] sm:$0xff] }
  0x1d   :  { %474 = vmatprep.subr.bf16.mxu0 %v532_v0  ;;  %v484_v44 = vpack.c.bf16 %v228_v43, %v227_v42  ;;  %v487_v47 = vpack.c.bf16 %v230_v46, %v229_v45  ;;  %v231_v48 = vld [vmem:[%s723_s5 + $0x60] sm:$0xff]  ;;  %v232_v49 = vld [vmem:[%s723_s5 + $0x68] sm:$0xff]  ;;  %v233_v56 = vld [vmem:[%s723_s5 + $0x70] sm:$0xff] }
  0x1e   :  { %v490_v50 = vpack.c.bf16 %v232_v49, %v231_v48  ;;  %v325_v51 = vld [vmem:[%s720_s2] ss:$0 sm:$0xff]  ;;  %v234_v57 = vld [vmem:[%s723_s5 + $0x78] sm:$0xff] }
  0x1f   :  { %455 = vmatpush3.bf16.msra.mxu1 %v454_v14  ;;  %v493_v58 = vpack.c.bf16 %v234_v57, %v233_v56  ;;  %v327_v59 = vld [vmem:[%s722_s4] ss:$0 sm:$0xff] }
  0x20   :  { %456 = vmatprep.subr.bf16.mxu1 %v532_v0  ;;  %476 = vmatpush3.bf16.msra.mxu0 %v475_v35 }
  0x21   :  { %477 = vmatprep.subr.bf16.mxu0 %v532_v0 }
  0x23   :  { %458 = vmatpush3.bf16.msra.mxu1 %v457_v17 }
  0x24   :  { %459 = vmatprep.subr.bf16.mxu1 %v532_v0  ;;  %479 = vmatpush3.bf16.msra.mxu0 %v478_v38 }
  0x25   :  { %480 = vmatprep.subr.bf16.mxu0 %v532_v0 }
  0x27   :  { %461 = vmatpush3.bf16.msra.mxu1 %v460_v20 }
  0x28   :  { %462 = vmatprep.subr.bf16.mxu1 %v532_v0  ;;  %482 = vmatpush3.bf16.msra.mxu0 %v481_v41 }
  0x29   :  { %483 = vmatprep.subr.bf16.mxu0 %v532_v0 }
  0x2b   :  { %464 = vmatpush3.bf16.msra.mxu1 %v463_v23 }
  0x2c   :  { %465 = vmatprep.subr.bf16.mxu1 %v532_v0  ;;  %485 = vmatpush3.bf16.msra.mxu0 %v484_v44 }
  0x2d   :  { %486 = vmatprep.subr.bf16.mxu0 %v532_v0 }
  0x2f   :  { %467 = vmatpush3.bf16.msra.mxu1 %v466_v26 }
  0x30   :  { %468 = vmatprep.subr.bf16.mxu1 %v532_v0  ;;  %488 = vmatpush3.bf16.msra.mxu0 %v487_v47 }
  0x31   :  { %489 = vmatprep.subr.bf16.mxu0 %v532_v0 }
  0x33   :  { %470 = vmatpush3.bf16.msra.mxu1 %v469_v29 }
  0x34   :  { %491 = vmatpush3.bf16.msra.mxu0 %v490_v50 }
  0x35   :  { %492 = vmatprep.subr.bf16.mxu0 %v532_v0  ;;  %v328_v0 = vld [vmem:[%s724_s6] ss:$0 sm:$0xff] }
  0x38   :  { %494 = vmatpush3.bf16.msra.mxu0 %v493_v58 }
  0xec   :  { %v120_v52 = vpop.f32.mrb[0].mxu0 }
  0xed   :  { %v121_v53 = vadd.f32 %v325_v51, %v120_v52  ;;  %v373_v54 = vpop.f32.mrb[1].mxu0 }
  0xef   :  { %v124_v55 = vmax.f32 %v121_v53, 0.0 }
  0xf1   :  { %407 = vmatmul.mubr.f32.vlgmr.msra.gmra.mrb[0].mxu1 %v124_v55 }
 0x1c4   :  { %v214_v60 = vpop.f32.mrb[0].mxu1 }
 0x1c5   :  { %v215_v61 = vadd.f32 %v327_v59, %v214_v60  ;;  %v408_v62 = vpop.f32.mrb[1].mxu1 }
 0x1c7   :  { %v218_v63 = vmax.f32 %v215_v61, 0.0 }
 0x1c9   :  { %442 = vmatmul.mubr.f32.vlgmr.msra.gmra.mrb[2].mxu0 %v218_v63 }
 0x29c   :  { %v308_v1 = vpop.f32.mrb[2].mxu0 }
 0x29d   :  { %v309_v2 = vadd.f32 %v328_v0, %v308_v1  ;;  %v443_v3 = vpop.f32.mrb[3].mxu0 }
 0x29f   :  { %v329_v4 = vmul.f32 -1.442695, %v309_v2 }
 0x2a1   :  { %501 = vpow2.f32 %v329_v4 }
 0x2ab   :  { %v502_v5 = vpop.eup %501 }
 0x2ac   :  { %v315_v6 = vadd.f32 1.0, %v502_v5 }
 0x2ae   :  { %503 = vrcp.f32 %v315_v6 }
 0x2b8   :  { %v504_v7 = vpop.eup %503 }
 0x2b9   :  { %319 = vst.msk [vmem:[%s725_s7] sm:$0xff] %vm318_vm2, %v504_v7 }
 0x2ba   :  { %324 = vsyncpa [#allocation3], 1 }

</bundles_post_ra>
